<compile_context>
chip_gen: v6e
topology: v6e:2x2x1
jax: 0.10.0
libtpu: 0.0.40
codegen_flags: <defaults>
</compile_context>

<pallas_src>
import jax
import jax.numpy as jnp
from jax import lax
from jax.experimental import pallas as pl
from jax.experimental.pallas import tpu as pltpu

_EPS_SQ = 1e-24  # (1e-12)^2 -> rsqrt(max(sumsq, eps^2)) == 1 / max(||.||, 1e-12)


def _round_up(n, m):
    return ((n + m - 1) // m) * m


# ---------------------------------------------------------------------------
# Kernel
# ---------------------------------------------------------------------------
def _cosine_classifier_kernel(scale_ref, inv_x_ref, x_ref, w_ref, o_ref,
                              acc_ref, inv_w_ref):
    """grid = (nk, nb, nc):
         j = pl.program_id(0): class tile   (parallel, outer)
         i = pl.program_id(1): batch tile   (arbitrary)
         c = pl.program_id(2): channel tile (arbitrary, reduction, inner)

    scale_ref : SMEM (1,) f32
    inv_x_ref : VMEM (tm, 1) f32  precomputed 1/max(||x_row||, eps)
    x_ref     : VMEM (tm, tc)     x tile (same dtype as W: f32 or bf16)
    w_ref     : VMEM (tc, tn)     W tile (f32 or bf16, prepared once)
    o_ref     : VMEM (tm, tn) f32 output tile
    acc_ref   : VMEM (tm, tn) f32 matmul accumulator (across C tiles)
    inv_w_ref : VMEM (1, tn) f32  W-col sumsq accumulator -> inv-norm * scale
    """
    i = pl.program_id(1)
    c = pl.program_id(2)
    nc = pl.num_programs(2)
    first_b = i == 0

    w = w_ref[...]  # single load, reused for norm (upcast) and matmul

    # --- W-column inverse norms: computed once per class tile (first batch
    #     tile only), accumulated over C tiles, cached for later batch tiles.
    @pl.when(jnp.logical_and(first_b, c == 0))
    def _():
        inv_w_ref[...] = jnp.zeros_like(inv_w_ref)

    @pl.when(first_b)
    def _():
        wf = w.astype(jnp.float32)           # upcast for f32 sum-of-squares
        inv_w_ref[...] += jnp.sum(wf * wf, axis=0, keepdims=True)

    @pl.when(jnp.logical_and(first_b, c == nc - 1))
    def _():
        inv_w_ref[...] = (lax.rsqrt(jnp.maximum(inv_w_ref[...], _EPS_SQ))
                          * scale_ref[0])

    # --- Raw matmul on the MXU, f32 accumulation across C tiles. ---
    @pl.when(c == 0)
    def _():
        acc_ref[...] = jnp.zeros_like(acc_ref)

    acc_ref[...] += jnp.dot(x_ref[...], w, preferred_element_type=jnp.float32)

    # --- Epilogue: single fused rank-1 rescale (normalization + scale). ---
    @pl.when(c == nc - 1)
    def _():
        o_ref[...] = acc_ref[...] * inv_x_ref[...] * inv_w_ref[...]


# ---------------------------------------------------------------------------
# Parameter-level (one-time) weight preparation
# ---------------------------------------------------------------------------
def prepare_weight(weight, dot_dtype=jnp.bfloat16):
    """Call ONCE per parameter update, not per forward.

    weight: [num_classes, num_channels] f32 (PyTorch layout).
    Returns (w_t, num_classes) where w_t is [C, K_pad] with K padded to a
    multiple of 128 (lane-dense output stores, no per-call pad) and cast to
    `dot_dtype` (bf16 halves HBM traffic and VMEM for the dominant operand;
    pass None to keep f32).
    """
    K, C = weight.shape
    k_pad = _round_up(K, 128)
    w_t = jnp.asarray(weight).T
    if k_pad != K:
        w_t = jnp.pad(w_t, ((0, 0), (0, k_pad - K)))
    if dot_dtype is not None:
        w_t = w_t.astype(dot_dtype)
    return w_t, K


# ---------------------------------------------------------------------------
# Forward wrapper
# ---------------------------------------------------------------------------
def cosine_classifier_forward(x, w_prepared, scale, num_classes=None, *,
                              tm=None, tn_cap=512, tc_cap=512, w_buffers=3):
    """x: [B, C] float; w_prepared: [C, K_pad] from prepare_weight; scale scalar."""
    B, C = x.shape
    C2, k_pad = w_prepared.shape
    assert C == C2 and k_pad % 128 == 0
    K = num_classes if num_classes is not None else k_pad

    dot_dtype = w_prepared.dtype
    bf16_mxu = dot_dtype == jnp.bfloat16

    # ---- class tile: largest multiple of 128 <= tn_cap that divides K_pad
    #      exactly (no ragged tile, no oversized zero-column padding).
    tn = 128
    for cand in range(min(tn_cap, k_pad) // 128, 0, -1):
        if k_pad % (128 * cand) == 0:
            tn = 128 * cand
            break
    # keep >= 2 class tiles when possible (megacore sharding of the K axis)
    if k_pad // tn < 2 and k_pad >= 256 and (k_pad // 2) % 128 == 0:
        tn = k_pad // 2

    # ---- batch tile: 256 for large batches (v6e/v7x MXU rows), 16-row align
    #      for bf16 operands (sublane packing), 8 for f32.
    row_align = 16 if bf16_mxu else 8
    if tm is None:
        tm = 256 if B >= 256 else B
    tm = _round_up(min(max(tm, 1), 256), row_align)
    b_pad = _round_up(B, tm)

    # ---- channel (reduction) tile: bounds VMEM independent of C.
    tc = C
    if C % 128 == 0 and C > tc_cap:
        for cand in range(max(tc_cap // 128, 1), 0, -1):
            if C % (128 * cand) == 0:
                tc = 128 * cand
                break

    nk, nb, nc = k_pad // tn, b_pad // tm, C // tc

    # ---- per-call activation prep (cheap: only [B, C] sized ops).
    xf = x.astype(jnp.float32)
    inv_x = lax.rsqrt(jnp.maximum(
        jnp.sum(xf * xf, axis=1, keepdims=True), _EPS_SQ))        # [B, 1] f32
    x_mm = x.astype(dot_dtype)                                    # once, not per step
    if b_pad != B:
        x_mm = jnp.pad(x_mm, ((0, b_pad - B), (0, 0)))
        inv_x = jnp.pad(inv_x, ((0, b_pad - B), (0, 0)))
    scale_arr = jnp.asarray(scale, dtype=jnp.float32).reshape((1,))

    # ---- W BlockSpec, optionally with a deeper pipeline when the same class
    #      tile is reused across several batch tiles.
    w_idx = lambda j, i, c: (c, j)
    use_deep = nb > 1 and w_buffers > 2
    w_spec = pl.BlockSpec((tc, tn), w_idx)
    if use_deep:
        try:
            w_spec = pl.BlockSpec((tc, tn), w_idx,
                                  pipeline_mode=pl.Buffered(w_buffers))
        except (TypeError, AttributeError):
            use_deep = False    # older Pallas: fall back to default depth

    # ---- VMEM budget: only set an explicit limit when the working set is big
    #      (keeps headroom explicit on v7x's 64 MiB VMEM).
    op_bytes = 2 if bf16_mxu else 4
    n_w_buf = w_buffers if use_deep else 2
    vmem_est = (n_w_buf * tc * tn * op_bytes      # W pipeline buffers
                + 2 * tm * tc * op_bytes          # x double buffer
                + 2 * tm * 4                      # inv_x double buffer
                + 2 * tm * tn * 4                 # output double buffer
                + tm * tn * 4 + tn * 4)           # scratch (acc, inv_w)
    compiler_kwargs = dict(
        dimension_semantics=("parallel", "arbitrary", "arbitrary"))
    if vmem_est > 12 * 1024 * 1024:
        compiler_kwargs["vmem_limit_bytes"] = int(
            min(2 * vmem_est + (4 << 20), 96 << 20))

    out = pl.pallas_call(
        _cosine_classifier_kernel,
        out_shape=jax.ShapeDtypeStruct((b_pad, k_pad), jnp.float32),
        grid=(nk, nb, nc),
        in_specs=[
            pl.BlockSpec(memory_space=pltpu.SMEM),                 # scale (1,)
            pl.BlockSpec((tm, 1), lambda j, i, c: (i, 0)),         # inv_x tile
            pl.BlockSpec((tm, tc), lambda j, i, c: (i, c)),        # x tile
            w_spec,                                                # W tile
        ],
        out_specs=pl.BlockSpec((tm, tn), lambda j, i, c: (i, j)),
        scratch_shapes=[pltpu.VMEM((tm, tn), jnp.float32),         # acc
                        pltpu.VMEM((1, tn), jnp.float32)],         # inv_w*scale
        compiler_params=pltpu.CompilerParams(**compiler_kwargs),
    )(scale_arr, inv_x, x_mm, w_prepared)

    return out[:B, :K]


# ---------------------------------------------------------------------------
# Pure-JAX reference
# ---------------------------------------------------------------------------
def reference_forward(x, weight_t, scale):
    x_n = x / jnp.maximum(
        jnp.sqrt(jnp.sum(x * x, axis=1, keepdims=True)), 1e-12)
    w_n = weight_t / jnp.maximum(
        jnp.sqrt(jnp.sum(weight_t * weight_t, axis=0, keepdims=True)), 1e-12)
    return (x_n @ w_n) * scale


if __name__ == "__main__":
    key = jax.random.PRNGKey(0)
    kx, kw, kx2, kw2 = jax.random.split(key, 4)
    scale = 20.0  # module default scale_cls

    # ---- Case 1: module-consistent small shapes, exact f32 MXU path. ----
    B, C, K = 8, 32, 16
    weight = jax.random.normal(kw, (K, C), jnp.float32) * jnp.sqrt(2.0 / C)
    x = jax.random.normal(kx, (B, C), jnp.float32)

    w_f32, k_true = prepare_weight(weight, dot_dtype=None)   # one-time prep
    out = jax.block_until_ready(
        cosine_classifier_forward(x, w_f32, scale, num_classes=k_true))
    ref = reference_forward(x, weight.T, scale)
    assert out.shape == (B, K)
    assert jnp.allclose(out, ref, atol=1e-4, rtol=1e-4), "f32 path mismatch"

    # ---- Case 2: larger shapes with bf16 weights — exercises multi-tile
    #      class / batch / channel grid axes and the cached inv_w path. ----
    B2, C2, K2 = 384, 1024, 600
    weight2 = jax.random.normal(kw2, (K2, C2), jnp.float32) * jnp.sqrt(2.0 / C2)
    x2 = jax.random.normal(kx2, (B2, C2), jnp.float32)

    w_bf16, k2_true = prepare_weight(weight2, dot_dtype=jnp.bfloat16)
    out2 = jax.block_until_ready(
        cosine_classifier_forward(x2, w_bf16, scale, num_classes=k2_true))
    ref2 = reference_forward(x2, weight2.T, scale)
    assert out2.shape == (B2, K2)
    max_err = float(jnp.max(jnp.abs(out2 - ref2)))
    assert max_err < 0.15, f"bf16 path mismatch (max abs err {max_err})"

    print("KERNEL_OK")
</pallas_src>

<mosaic_0001>
module attributes {stable_mosaic.version = 11 : i64} {
  func.func @_cosine_classifier_kernel(%arg0: i32, %arg1: i32, %arg2: i32, %arg3: memref<1xf32, #tpu.memory_space<smem>>, %arg4: memref<8x1xf32, #tpu.memory_space<vmem>>, %arg5: memref<8x32xf32, #tpu.memory_space<vmem>>, %arg6: memref<32x128xf32, #tpu.memory_space<vmem>>, %arg7: memref<8x128xf32, #tpu.memory_space<vmem>>, %arg8: memref<8x128xf32, #tpu.memory_space<vmem>>, %arg9: memref<1x128xf32, #tpu.memory_space<vmem>>) attributes {dimension_semantics = [#tpu.dimension_semantics<parallel>, #tpu.dimension_semantics<arbitrary>, #tpu.dimension_semantics<arbitrary>], iteration_bounds = array<i64: 1, 1, 1>, scalar_prefetch = 0 : i64, scratch_operands = 2 : i64, tpu.core_type = #tpu.core_type<tc>, window_params = [{transform_indices = @transform_0, window_bounds = array<i64: 1>}, {transform_indices = @transform_1, window_bounds = array<i64: 8, 1>}, {transform_indices = @transform_2, window_bounds = array<i64: 8, 32>}, {transform_indices = @transform_3, window_bounds = array<i64: 32, 128>}, {transform_indices = @transform_4, window_bounds = array<i64: 8, 128>}]} {
    %c0_i32 = arith.constant 0 : i32
    %0 = arith.cmpi eq, %arg1, %c0_i32 : i32
    %c0 = arith.constant 0 : index
    %c0_0 = arith.constant 0 : index
    %1 = vector.load %arg6[%c0, %c0_0] : memref<32x128xf32, #tpu.memory_space<vmem>>, vector<32x128xf32>
    %c0_i32_1 = arith.constant 0 : i32
    %2 = arith.cmpi eq, %arg2, %c0_i32_1 : i32
    %3 = arith.andi %0, %2 : i1
    %4 = arith.extui %3 : i1 to i32
    %c0_i32_2 = arith.constant 0 : i32
    %5 = arith.cmpi ne, %4, %c0_i32_2 : i32
    scf.if %5 {
      %cst_16 = arith.constant 0.000000e+00 : f32
      %23 = vector.broadcast %cst_16 : f32 to vector<1x128xf32>
      %c0_17 = arith.constant 0 : index
      %c0_18 = arith.constant 0 : index
      %24 = vector.load %arg9[%c0_17, %c0_18] : memref<1x128xf32, #tpu.memory_space<vmem>>, vector<1x128xf32>
      tpu.vector_store %arg9[%c0_17, %c0_18], %23 {strides = array<i32>} : memref<1x128xf32, #tpu.memory_space<vmem>>, vector<1x128xf32>,
    } else {
    }
    %6 = arith.extui %0 : i1 to i32
    %c0_i32_3 = arith.constant 0 : i32
    %7 = arith.cmpi ne, %6, %c0_i32_3 : i32
    scf.if %7 {
      %c0_16 = arith.constant 0 : index
      %c0_17 = arith.constant 0 : index
      %23 = vector.load %arg9[%c0_16, %c0_17] : memref<1x128xf32, #tpu.memory_space<vmem>>, vector<1x128xf32>
      %24 = arith.mulf %1, %1 : vector<32x128xf32>
      %cst_18 = arith.constant dense<0.000000e+00> : vector<128xf32>
      %25 = vector.multi_reduction <add>, %24, %cst_18 [0] : vector<32x128xf32> to vector<128xf32>
      %26 = vector.shape_cast %25 : vector<128xf32> to vector<1x128xf32>
      %27 = arith.addf %23, %26 : vector<1x128xf32>
      %c0_19 = arith.constant 0 : index
      %c0_20 = arith.constant 0 : index
      %28 = vector.load %arg9[%c0_19, %c0_20] : memref<1x128xf32, #tpu.memory_space<vmem>>, vector<1x128xf32>
      tpu.vector_store %arg9[%c0_19, %c0_20], %27 {strides = array<i32>} : memref<1x128xf32, #tpu.memory_space<vmem>>, vector<1x128xf32>,
    } else {
    }
    %c0_i32_4 = arith.constant 0 : i32
    %8 = arith.cmpi eq, %arg2, %c0_i32_4 : i32
    %9 = arith.andi %0, %8 : i1
    %10 = arith.extui %9 : i1 to i32
    %c0_i32_5 = arith.constant 0 : i32
    %11 = arith.cmpi ne, %10, %c0_i32_5 : i32
    scf.if %11 {
      %c0_16 = arith.constant 0 : index
      %c0_17 = arith.constant 0 : index
      %23 = vector.load %arg9[%c0_16, %c0_17] : memref<1x128xf32, #tpu.memory_space<vmem>>, vector<1x128xf32>
      %cst_18 = arith.constant 1.000000e-24 : f32
      %24 = vector.broadcast %cst_18 : f32 to vector<1x128xf32>
      %25 = arith.maximumf %23, %24 : vector<1x128xf32>
      %26 = math.rsqrt %25 : vector<1x128xf32>
      %c0_19 = arith.constant 0 : index
      %27 = memref.load %arg3[%c0_19] : memref<1xf32, #tpu.memory_space<smem>>
      %28 = vector.broadcast %27 : f32 to vector<1x128xf32>
      %29 = arith.mulf %26, %28 : vector<1x128xf32>
      %c0_20 = arith.constant 0 : index
      %c0_21 = arith.constant 0 : index
      %30 = vector.load %arg9[%c0_20, %c0_21] : memref<1x128xf32, #tpu.memory_space<vmem>>, vector<1x128xf32>
      tpu.vector_store %arg9[%c0_20, %c0_21], %29 {strides = array<i32>} : memref<1x128xf32, #tpu.memory_space<vmem>>, vector<1x128xf32>,
    } else {
    }
    %c0_i32_6 = arith.constant 0 : i32
    %12 = arith.cmpi eq, %arg2, %c0_i32_6 : i32
    %13 = arith.extui %12 : i1 to i32
    %c0_i32_7 = arith.constant 0 : i32
    %14 = arith.cmpi ne, %13, %c0_i32_7 : i32
    scf.if %14 {
      %cst_16 = arith.constant 0.000000e+00 : f32
      %23 = vector.broadcast %cst_16 : f32 to vector<8x128xf32>
      %c0_17 = arith.constant 0 : index
      %c0_18 = arith.constant 0 : index
      %24 = vector.load %arg8[%c0_17, %c0_18] : memref<8x128xf32, #tpu.memory_space<vmem>>, vector<8x128xf32>
      tpu.vector_store %arg8[%c0_17, %c0_18], %23 {strides = array<i32>} : memref<8x128xf32, #tpu.memory_space<vmem>>, vector<8x128xf32>,
    } else {
    }
    %c0_8 = arith.constant 0 : index
    %c0_9 = arith.constant 0 : index
    %15 = vector.load %arg8[%c0_8, %c0_9] : memref<8x128xf32, #tpu.memory_space<vmem>>, vector<8x128xf32>
    %c0_10 = arith.constant 0 : index
    %c0_11 = arith.constant 0 : index
    %16 = vector.load %arg5[%c0_10, %c0_11] : memref<8x32xf32, #tpu.memory_space<vmem>>, vector<8x32xf32>
    %cst = arith.constant dense<0.000000e+00> : vector<8x128xf32>
    %17 = tpu.matmul %16, %1, %cst {dimension_numbers = #tpu.dot_dimension_numbers<[1], [0], [0], [1], [0, 0, 1, 1], [], []>} : vector<8x32xf32>, vector<32x128xf32>, vector<8x128xf32> -> vector<8x128xf32>
    %18 = arith.addf %15, %17 : vector<8x128xf32>
    %c0_12 = arith.constant 0 : index
    %c0_13 = arith.constant 0 : index
    %19 = vector.load %arg8[%c0_12, %c0_13] : memref<8x128xf32, #tpu.memory_space<vmem>>, vector<8x128xf32>
    tpu.vector_store %arg8[%c0_12, %c0_13], %18 {strides = array<i32>} : memref<8x128xf32, #tpu.memory_space<vmem>>, vector<8x128xf32>,
    %c0_i32_14 = arith.constant 0 : i32
    %20 = arith.cmpi eq, %arg2, %c0_i32_14 : i32
    %21 = arith.extui %20 : i1 to i32
    %c0_i32_15 = arith.constant 0 : i32
    %22 = arith.cmpi ne, %21, %c0_i32_15 : i32
    scf.if %22 {
      %c0_16 = arith.constant 0 : index
      %c0_17 = arith.constant 0 : index
      %23 = vector.load %arg8[%c0_16, %c0_17] : memref<8x128xf32, #tpu.memory_space<vmem>>, vector<8x128xf32>
      %c0_18 = arith.constant 0 : index
      %c0_19 = arith.constant 0 : index
      %24 = vector.load %arg4[%c0_18, %c0_19] : memref<8x1xf32, #tpu.memory_space<vmem>>, vector<8x1xf32>
      %25 = vector.broadcast %24 : vector<8x1xf32> to vector<8x128xf32>
      %26 = arith.mulf %23, %25 : vector<8x128xf32>
      %c0_20 = arith.constant 0 : index
      %c0_21 = arith.constant 0 : index
      %27 = vector.load %arg9[%c0_20, %c0_21] : memref<1x128xf32, #tpu.memory_space<vmem>>, vector<1x128xf32>
      %28 = vector.broadcast %27 : vector<1x128xf32> to vector<8x128xf32>
      %29 = arith.mulf %26, %28 : vector<8x128xf32>
      %c0_22 = arith.constant 0 : index
      %c0_23 = arith.constant 0 : index
      %30 = vector.load %arg7[%c0_22, %c0_23] : memref<8x128xf32, #tpu.memory_space<vmem>>, vector<8x128xf32>
      tpu.vector_store %arg7[%c0_22, %c0_23], %29 {strides = array<i32>} : memref<8x128xf32, #tpu.memory_space<vmem>>, vector<8x128xf32>,
    } else {
    }
    return
  }
  func.func @transform_0(%arg0: i32, %arg1: i32, %arg2: i32) -> i32 {
    %c0_i32 = arith.constant 0 : i32
    %c0_i32_0 = arith.constant 0 : i32
    return %c0_i32 : i32
  }
  func.func @transform_1(%arg0: i32, %arg1: i32, %arg2: i32) -> (i32, i32) {
    %c0_i32 = arith.constant 0 : i32
    %c0_i32_0 = arith.constant 0 : i32
    return %arg1, %c0_i32 : i32, i32
  }
  func.func @transform_2(%arg0: i32, %arg1: i32, %arg2: i32) -> (i32, i32) {
    %c0_i32 = arith.constant 0 : i32
    return %arg1, %arg2 : i32, i32
  }
  func.func @transform_3(%arg0: i32, %arg1: i32, %arg2: i32) -> (i32, i32) {
    %c0_i32 = arith.constant 0 : i32
    return %arg2, %arg0 : i32, i32
  }
  func.func @transform_4(%arg0: i32, %arg1: i32, %arg2: i32) -> (i32, i32) {
    %c0_i32 = arith.constant 0 : i32
    return %arg1, %arg0 : i32, i32
  }
}

</mosaic_0001>

<bundles_post_ra>
// kernel: tpu_custom_call.1
= control target key start
LH: loop header
LB: loop body
LE: loop exit
PB: predicated region body
PF: predicated region fallthrough
CT: control target
= control target key end

     0   :  { %10 = vsyncpa [#allocation6], 0  ;;  %s308_s0 = inlined_call_operand.<no memory space> [shape: f32[1], index: 0, kind: input, shape index: {}]   ;;  %s309_s1 = inlined_call_operand.vmem [shape: f32[8,1], index: 1, kind: input, shape index: {}]   ;;  %s310_s2 = inlined_call_operand.vmem [shape: f32[8,32], index: 2, kind: input, shape index: {}]   ;;  %s311_s3 = inlined_call_operand.hbm [shape: f32[32,128], index: 3, kind: input, shape index: {}]   ;;  %s312_s4 = inlined_call_operand.hbm [shape: f32[8,128], index: 4, kind: output, shape index: {}]  }
   0x1   :  { %11 = vsyncpa [#allocation7], 0  ;;  %s261_s15 = smov [#allocation5]  }
   0x2   :  { %s23_s16 = sshll.u32 %s261_s15, 4  ;;  %s24_s16 = int_to_ptr.vmem [resolvable:$true] %s23_s16 }
   0x3   :  { %s225_s17 = scalar_lea.vmem %s24_s16, 512  ;;  %p230_p1 = scmp.lt.s32.totalorder %s24_s16, %s24_s16 }
   0x4   :  { %p226_p0 = scmp.ne.s32.totalorder %s24_s16, %s225_s17  ;;  %p231_p2 = scmp.lt.s32.totalorder %s225_s17, %s225_s17 }
   0x6   :  { %p232_p3 = por %p231_p2, %p230_p1 }
   0x8   :  { %p233_p4 = pnand %p232_p3, %p226_p0 }
   0xa   :  { %236 = shalt.err (!%p233_p4)
}
   0xb   :  { %s262_s18 = smov 128   ;;  %s263_s19 = smov 8  }
   0xc   :  { %29 = dma.hbm_to_vmem [thread:$0]  %s311_s3, 512, %s24_s16, [#allocation6], %s262_s18, %s262_s18, %s263_s19  }
   0xd   :  { %257 = dma.done.wait [#allocation6], 512  }
   0xe   :  { %258 = vsyncadd [#allocation6], 4294966784  ;;  %v264_v0 = vmov 0.0   ;;  %vm265_vm0 = vmmov 0   ;;  %v266_v1 = vmov 0   ;;  %v37_v2 = vld [vmem:[#allocation5 + $0x18] sm:$0xff]  ;;  %v69_v25 = vstv %s308_s0 }
   0xf   :  { %43 = vst [vmem:[#allocation3] sm:$0x1] %v264_v0  ;;  %196 = vmatprep.subr.mxu0 %v264_v0  ;;  %204 = vmatprep.mubr.msk.f32.mxu0 %vm265_vm0, %v264_v0  ;;  %v36_v3 = vld [vmem:[#allocation5 + $0x10] sm:$0xff]  ;;  %v35_v4 = vld [vmem:[#allocation5 + $0x8] sm:$0xff]  ;;  %v34_v6 = vld [vmem:[#allocation5] sm:$0xff]  ;;  %v51_v10 = vmul.f32 %v37_v2, %v37_v2  ;;  %vm78_vm1 = vcmask 261120  }
  0x10   :  { %214 = vset.pattern.permute.xlu0 %v266_v1  ;;  %197 = vmatpush3.msra.mxu0 %v37_v2  ;;  %v49_v5 = vmul.f32 %v35_v4, %v35_v4  ;;  %v50_v7 = vmul.f32 %v36_v3, %v36_v3  ;;  %v48_v8 = vmul.f32 %v34_v6, %v34_v6  ;;  %v158_v9 = vld [vmem:[%s309_s1] sm:$0xff]  ;;  %s267_s25 = smov [#allocation8]  }
  0x11   :  { %198 = vmatprep.subr.mxu0 %v264_v0  ;;  %161 = vperm.xlu0 %214, %v158_v9   ;;  %v77_v12 = vld [vmem:[%s310_s2] sm:$0xff]  ;;  %s180_s26 = sshll.u32 %s267_s25, 4  ;;  %s181_s26 = int_to_ptr.vmem [resolvable:$true] %s180_s26 }
  0x12   :  { %199 = vmatpush3.msra.mxu0 %v36_v3  ;;  %v52_v11 = vadd.f32 %v49_v5, %v48_v8  ;;  %s237_s27 = scalar_lea.vmem %s181_s26, 128  ;;  %p242_p6 = scmp.lt.s32.totalorder %s181_s26, %s181_s26 }
  0x13   :  { %200 = vmatprep.subr.mxu0 %v264_v0  ;;  %p238_p5 = scmp.ne.s32.totalorder %s181_s26, %s237_s27  ;;  %p243_p7 = scmp.lt.s32.totalorder %s237_s27, %s237_s27 }
  0x14   :  { %201 = vmatpush3.msra.mxu0 %v35_v4  ;;  %v53_v13 = vadd.f32 %v52_v11, %v50_v7 }
  0x15   :  { %202 = vmatprep.subr.mxu0 %v264_v0  ;;  %p244_p8 = por %p243_p7, %p242_p6 }
  0x16   :  { %203 = vmatpush3.msra.mxu0 %v34_v6  ;;  %v54_v14 = vadd.f32 %v53_v13, %v51_v10  ;;  %v47_v20 = vld [vmem:[#allocation3] sm:$0x1] }
  0x17   :  { %205 = vmatmul.mubr.msk.f32.vlgmr.msra.gmra.mxu0 %vm78_vm1, %v77_v12  ;;  %p245_p9 = pnand %p244_p8, %p238_p5 }
  0x18   :  { %v55_v15 = vrot.slane %v54_v14, 4 }
  0x1a   :  { %v56_v16 = vadd.f32 %v55_v15, %v54_v14 }
  0x1c   :  { %v57_v17 = vrot.slane %v56_v16, 2 }
  0x1e   :  { %v58_v18 = vadd.f32 %v57_v17, %v56_v16 }
  0x20   :  { %v59_v19 = vrot.slane %v58_v18, 1 }
  0x22   :  { %v60_v21 = vadd.f32 %v59_v19, %v58_v18 }
  0x24   :  { %v61_v22 = vadd.f32 %v60_v21, %v47_v20 }
  0x26   :  { %62 = vst [vmem:[#allocation3] sm:$0x1] %v61_v22 }
  0x2d   :  { %v65_v23 = vld [vmem:[#allocation3] sm:$0x1] }
  0x2e   :  { %v66_v24 = vmax.f32 %v65_v23, 1e-24 }
  0x30   :  { %215 = vrsqrt.f32 %v66_v24 }
  0x3d   :  { %v216_v26 = vpop.eup %215 }
  0x3e   :  { %v70_v27 = vmul.f32 %v216_v26, %v69_v25 }
  0x40   :  { %71 = vst [vmem:[#allocation3] sm:$0x1] %v70_v27 }
  0x47   :  { %v190_v30 = vld [vmem:[#allocation3] ss:$0 sm:$0xff] }
  0x8c   :  { %v162_v28 = vpop.permute.xlu0 %161 }
  0xd7   :  { %v148_v29 = vpop.f32.mrf.mxu0 }
  0xd8   :  { %v164_v31 = vmul.f32 %v162_v28, %v148_v29 }
  0xd9   :  { %v206_v32 = vpop.f32.mrf.mxu0 }
  0xda   :  { %v172_v33 = vmul.f32 %v190_v30, %v164_v31 }
  0xdc   :  { %173 = vst [vmem:[#allocation8] sm:$0xff] %v172_v33 }
  0xdd   :  { %248 = shalt.err (!%p245_p9)
}
  0xde   :  { %183 = dma.vmem_to_hbm [thread:$0]  %s181_s26, 128, %s312_s4, [#allocation7]  }
  0xdf   :  { %259 = dma.done.wait [#allocation7], 128  }
  0xe0   :  { %260 = vsyncadd [#allocation7], 4294967168 }
  0xe1   :  { %187 = vsyncpa [#allocation6], 1 }
  0xe2   :  { %188 = vsyncpa [#allocation7], 1 }

</bundles_post_ra>
